<compile_context>
chip_gen: v7x
topology: tpu7x:2x2x1
jax: 0.10.0
libtpu: 0.0.40
codegen_flags: <defaults>
</compile_context>

<pallas_src>
import functools
import math

import jax
import jax.numpy as jnp
from jax import lax
from jax.experimental import pallas as pl
from jax.experimental.pallas import tpu as pltpu

_SUBLANES = 8


def _lstm_kernel(x_ref, x0_ref, w_ih_ref, w_hh_ref, b_ref, w_lin_ref,
                 b_lin_ref, out_ref, gx_ref, h_all_ref, *, T, Bp, H):
    """Single-program kernel: LSTM recurrence + (column-0) linear head.

    x_ref     : (T*Bp, I) f32   time-major flattened, batch padded to Bp
    x0_ref    : (1, T*Bp) f32   x[..., 0] residual, lane-major (t-major order)
    w_ih_ref  : (I, 4H)   f32   transposed weight_ih_l0, gate order [i,f,o,g]
    w_hh_ref  : (H, 4H)   f32   transposed weight_hh_l0, gate order [i,f,o,g]
    b_ref     : (1, 4H)   f32   bias_ih + bias_hh, gate order [i,f,o,g]
    w_lin_ref : (1, H)    f32   row 0 of lin.weight
    b_lin_ref : (1, 1)    f32   lin.bias[0]
    out_ref   : (1, T*Bp) f32   x[..., 0] + lin_out[..., 0], lane-dense
    gx_ref    : (T*Bp, 4H) VMEM scratch, precomputed input projection
    h_all_ref : (T*Bp, H)  VMEM scratch, all hidden states
    """
    # --- Hoisted input projection: one big MXU matmul + one bias broadcast. ---
    gx_ref[...] = (
        jnp.dot(x_ref[...], w_ih_ref[...], preferred_element_type=jnp.float32)
        + b_ref[...])

    w_hh = w_hh_ref[...]                                    # hoisted VMEM load
    # Lane mask: [i | f | o] bands get sigmoid, trailing [g] band gets tanh.
    sig_band = lax.broadcasted_iota(jnp.int32, (Bp, 4 * H), 1) < 3 * H

    def step(t, carry):
        h, c = carry
        r = pl.multiple_of(t * Bp, _SUBLANES)               # aligned (8,*) tile
        z = gx_ref[pl.ds(r, Bp), :] + jnp.dot(
            h, w_hh, preferred_element_type=jnp.float32)    # (Bp, 4H)

        # Activations on the full-width vreg (gate order [i, f, o, g]).
        act = jnp.where(sig_band, jax.nn.sigmoid(z), jnp.tanh(z))

        # Bring each gate band to lane offset 0 via XLU rolls; the trailing
        # offset-0 slices are free (no cross-lane extraction at 32/64/96).
        i_g = act[:, :H]
        f_g = pltpu.roll(act, 3 * H, axis=1)[:, :H]
        o_g = pltpu.roll(act, 2 * H, axis=1)[:, :H]
        g_g = pltpu.roll(act, 1 * H, axis=1)[:, :H]

        c_new = f_g * c + i_g * g_g
        h_new = o_g * jnp.tanh(c_new)
        h_all_ref[pl.ds(r, Bp), :] = h_new                  # off critical path
        return (h_new, c_new)

    h0 = jnp.zeros((Bp, H), jnp.float32)
    c0 = jnp.zeros((Bp, H), jnp.float32)
    lax.fori_loop(0, T, step, (h0, c0), unroll=min(T, 8))

    # --- Hoisted head: lin column 0 over all hidden states, lane-dense out. ---
    #   lin_row[0, j] = sum_h w_lin[0, h] * h_all[j, h]
    lin_row = lax.dot_general(
        w_lin_ref[...], h_all_ref[...],
        dimension_numbers=(((1,), (1,)), ((), ())),
        preferred_element_type=jnp.float32)                 # (1, T*Bp)
    out_ref[...] = x0_ref[...] + lin_row + b_lin_ref[...]   # single vreg store


def lstm_model_forward(x, params):
    """x: (B, T, I) float32 (batch_first, like PyTorch). Returns (B, T)."""
    w_ih, w_hh, b_ih, b_hh, w_lin, b_lin = params
    B, T, I = x.shape
    H = w_hh.shape[1]
    Bp = max(_SUBLANES, ((B + _SUBLANES - 1) // _SUBLANES) * _SUBLANES)

    # Gate column permutation: PyTorch [i, f, g, o] -> kernel [i, f, o, g].
    perm = jnp.concatenate([
        jnp.arange(0 * H, 1 * H), jnp.arange(1 * H, 2 * H),
        jnp.arange(3 * H, 4 * H), jnp.arange(2 * H, 3 * H)])
    w_ih_t = w_ih.T[:, perm].astype(jnp.float32)                  # (I, 4H)
    w_hh_t = w_hh.T[:, perm].astype(jnp.float32)                  # (H, 4H)
    b = (b_ih + b_hh)[perm].reshape(1, 4 * H).astype(jnp.float32)

    # Only row 0 of lin.weight / element 0 of lin.bias reach the output.
    w_lin0 = w_lin[0:1, :].astype(jnp.float32)                    # (1, H)
    b_lin0 = b_lin[0:1].reshape(1, 1).astype(jnp.float32)         # (1, 1)

    # Time-major layout with the batch padded to the sublane width so every
    # per-step slice in the kernel is a full, aligned (8, 128) tile.
    x_tm = jnp.transpose(x, (1, 0, 2)).astype(jnp.float32)        # (T, B, I)
    x_tm = jnp.pad(x_tm, ((0, 0), (0, Bp - B), (0, 0)))           # (T, Bp, I)
    x_flat = x_tm.reshape(T * Bp, I)
    # Residual x[..., 0] pre-laid-out lane-major to match the (1, T*Bp) output.
    x0_row = x_tm[:, :, 0].reshape(1, T * Bp)

    kernel = functools.partial(_lstm_kernel, T=T, Bp=Bp, H=H)
    out_row = pl.pallas_call(
        kernel,
        out_shape=jax.ShapeDtypeStruct((1, T * Bp), jnp.float32),
        in_specs=[pl.BlockSpec(memory_space=pltpu.MemorySpace.VMEM)] * 7,
        out_specs=pl.BlockSpec(memory_space=pltpu.MemorySpace.VMEM),
        scratch_shapes=[pltpu.VMEM((T * Bp, 4 * H), jnp.float32),
                        pltpu.VMEM((T * Bp, H), jnp.float32)],
    )(x_flat, x0_row, w_ih_t, w_hh_t, b, w_lin0, b_lin0)

    out_tm = out_row.reshape(T, Bp)[:, :B]                        # (T, B)
    return out_tm.T                                               # (B, T)


def lstm_model_forward_ref(x, params):
    """Pure-JAX reference of the same forward pass (PyTorch gate order)."""
    w_ih, w_hh, b_ih, b_hh, w_lin, b_lin = params
    B, T, I = x.shape
    H = w_hh.shape[1]

    def step(carry, x_t):
        h, c = carry
        gates = x_t @ w_ih.T + h @ w_hh.T + b_ih + b_hh
        i = jax.nn.sigmoid(gates[:, 0 * H:1 * H])
        f = jax.nn.sigmoid(gates[:, 1 * H:2 * H])
        g = jnp.tanh(gates[:, 2 * H:3 * H])
        o = jax.nn.sigmoid(gates[:, 3 * H:4 * H])
        c = f * c + i * g
        h = o * jnp.tanh(c)
        return (h, c), h

    x_tm = jnp.transpose(x, (1, 0, 2))                           # (T, B, I)
    (_, _), hs = lax.scan(step,
                          (jnp.zeros((B, H), jnp.float32),
                           jnp.zeros((B, H), jnp.float32)),
                          x_tm)                                  # (T, B, H)
    lin = hs @ w_lin.T + b_lin                                   # (T, B, O)
    out_tm = x_tm[..., 0] + lin[..., 0]                          # (T, B)
    return out_tm.T                                              # (B, T)


def init_params(key, input_size, output_size, hidden_size):
    """Deterministic init matching PyTorch parameter shapes."""
    k = 1.0 / math.sqrt(hidden_size)
    keys = jax.random.split(key, 6)
    w_ih = jax.random.uniform(keys[0], (4 * hidden_size, input_size),
                              jnp.float32, -k, k)
    w_hh = jax.random.uniform(keys[1], (4 * hidden_size, hidden_size),
                              jnp.float32, -k, k)
    b_ih = jax.random.uniform(keys[2], (4 * hidden_size,), jnp.float32, -k, k)
    b_hh = jax.random.uniform(keys[3], (4 * hidden_size,), jnp.float32, -k, k)
    w_lin = jax.random.uniform(keys[4], (output_size, hidden_size),
                               jnp.float32, -k, k)
    b_lin = jax.random.uniform(keys[5], (output_size,), jnp.float32, -k, k)
    return (w_ih, w_hh, b_ih, b_hh, w_lin, b_lin)


if __name__ == "__main__":
    B, T, INPUT_SIZE, HIDDEN_SIZE, OUTPUT_SIZE = 2, 8, 4, 32, 4

    key = jax.random.PRNGKey(0)
    k_x, k_p = jax.random.split(key)
    x = jax.random.normal(k_x, (B, T, INPUT_SIZE), jnp.float32)
    params = init_params(k_p, INPUT_SIZE, OUTPUT_SIZE, HIDDEN_SIZE)

    out = jax.block_until_ready(lstm_model_forward(x, params))
    ref = jax.block_until_ready(lstm_model_forward_ref(x, params))

    assert out.shape == (B, T), out.shape
    assert jnp.allclose(out, ref, rtol=1e-5, atol=1e-5), (
        float(jnp.max(jnp.abs(out - ref))))

    print("KERNEL_OK")
</pallas_src>

<mosaic_0001>
module attributes {stable_mosaic.version = 11 : i64} {
  func.func @_lstm_kernel(%arg0: memref<64x4xf32, #tpu.memory_space<vmem>>, %arg1: memref<1x64xf32, #tpu.memory_space<vmem>>, %arg2: memref<4x128xf32, #tpu.memory_space<vmem>>, %arg3: memref<32x128xf32, #tpu.memory_space<vmem>>, %arg4: memref<1x128xf32, #tpu.memory_space<vmem>>, %arg5: memref<1x32xf32, #tpu.memory_space<vmem>>, %arg6: memref<1x1xf32, #tpu.memory_space<vmem>>, %arg7: memref<1x64xf32, #tpu.memory_space<vmem>>, %arg8: memref<64x128xf32, #tpu.memory_space<vmem>>, %arg9: memref<64x32xf32, #tpu.memory_space<vmem>>) attributes {dimension_semantics = [], scalar_prefetch = 0 : i64, scratch_operands = 2 : i64, tpu.core_type = #tpu.core_type<tc>} {
    %c0 = arith.constant 0 : index
    %c0_0 = arith.constant 0 : index
    %0 = vector.load %arg0[%c0, %c0_0] : memref<64x4xf32, #tpu.memory_space<vmem>>, vector<64x4xf32>
    %c0_1 = arith.constant 0 : index
    %c0_2 = arith.constant 0 : index
    %1 = vector.load %arg2[%c0_1, %c0_2] : memref<4x128xf32, #tpu.memory_space<vmem>>, vector<4x128xf32>
    %cst = arith.constant dense<0.000000e+00> : vector<64x128xf32>
    %2 = tpu.matmul %0, %1, %cst {dimension_numbers = #tpu.dot_dimension_numbers<[1], [0], [0], [1], [0, 0, 1, 1], [], []>} : vector<64x4xf32>, vector<4x128xf32>, vector<64x128xf32> -> vector<64x128xf32>
    %c0_3 = arith.constant 0 : index
    %c0_4 = arith.constant 0 : index
    %3 = vector.load %arg4[%c0_3, %c0_4] : memref<1x128xf32, #tpu.memory_space<vmem>>, vector<1x128xf32>
    %4 = vector.broadcast %3 : vector<1x128xf32> to vector<64x128xf32>
    %5 = arith.addf %2, %4 : vector<64x128xf32>
    %c0_5 = arith.constant 0 : index
    %c0_6 = arith.constant 0 : index
    %6 = vector.load %arg8[%c0_5, %c0_6] : memref<64x128xf32, #tpu.memory_space<vmem>>, vector<64x128xf32>
    tpu.vector_store %arg8[%c0_5, %c0_6], %5 {strides = array<i32>} : memref<64x128xf32, #tpu.memory_space<vmem>>, vector<64x128xf32>,
    %c0_7 = arith.constant 0 : index
    %c0_8 = arith.constant 0 : index
    %7 = vector.load %arg3[%c0_7, %c0_8] : memref<32x128xf32, #tpu.memory_space<vmem>>, vector<32x128xf32>
    %8 = tpu.iota {dimensions = array<i32: 1>} : vector<8x128xi32>
    %c96_i32 = arith.constant 96 : i32
    %9 = vector.broadcast %c96_i32 : i32 to vector<8x128xi32>
    %10 = arith.cmpi slt, %8, %9 : vector<8x128xi32>
    %cst_9 = arith.constant 0.000000e+00 : f32
    %11 = vector.broadcast %cst_9 : f32 to vector<8x32xf32>
    %cst_10 = arith.constant 0.000000e+00 : f32
    %12 = vector.broadcast %cst_10 : f32 to vector<8x32xf32>
    %c0_i32 = arith.constant 0 : i32
    %c8_i32 = arith.constant 8 : i32
    %13 = arith.muli %c0_i32, %c8_i32 : i32
    %14 = tpu.assume_multiple %13, 8 : i32
    %15 = arith.index_cast %14 : i32 to index
    %c0_11 = arith.constant 0 : index
    %16 = vector.load %arg8[%15, %c0_11] : memref<64x128xf32, #tpu.memory_space<vmem>>, vector<8x128xf32>
    %cst_12 = arith.constant dense<0.000000e+00> : vector<8x128xf32>
    %17 = tpu.matmul %11, %7, %cst_12 {dimension_numbers = #tpu.dot_dimension_numbers<[1], [0], [0], [1], [0, 0, 1, 1], [], []>} : vector<8x32xf32>, vector<32x128xf32>, vector<8x128xf32> -> vector<8x128xf32>
    %18 = arith.addf %16, %17 : vector<8x128xf32>
    %19 = arith.negf %18 : vector<8x128xf32>
    %20 = math.exp %19 : vector<8x128xf32>
    %cst_13 = arith.constant 1.000000e+00 : f32
    %21 = vector.broadcast %cst_13 : f32 to vector<8x128xf32>
    %22 = arith.addf %21, %20 : vector<8x128xf32>
    %23 = arith.divf %21, %22 : vector<8x128xf32>
    %24 = math.tanh %18 : vector<8x128xf32>
    %25 = arith.select %10, %23, %24 : vector<8x128xi1>, vector<8x128xf32>
    %26 = vector.extract_strided_slice %25 {offsets = [0, 0], sizes = [8, 32], strides = [1, 1]} : vector<8x128xf32> to vector<8x32xf32>
    %c96_i32_14 = arith.constant 96 : i32
    %27 = tpu.dynamic_rotate %25 by %c96_i32_14 dim 1 : vector<8x128xf32>, i32 -> vector<8x128xf32>
    %28 = vector.extract_strided_slice %27 {offsets = [0, 0], sizes = [8, 32], strides = [1, 1]} : vector<8x128xf32> to vector<8x32xf32>
    %c64_i32 = arith.constant 64 : i32
    %29 = tpu.dynamic_rotate %25 by %c64_i32 dim 1 : vector<8x128xf32>, i32 -> vector<8x128xf32>
    %30 = vector.extract_strided_slice %29 {offsets = [0, 0], sizes = [8, 32], strides = [1, 1]} : vector<8x128xf32> to vector<8x32xf32>
    %c32_i32 = arith.constant 32 : i32
    %31 = tpu.dynamic_rotate %25 by %c32_i32 dim 1 : vector<8x128xf32>, i32 -> vector<8x128xf32>
    %32 = vector.extract_strided_slice %31 {offsets = [0, 0], sizes = [8, 32], strides = [1, 1]} : vector<8x128xf32> to vector<8x32xf32>
    %33 = arith.mulf %28, %12 : vector<8x32xf32>
    %34 = arith.mulf %26, %32 : vector<8x32xf32>
    %35 = arith.addf %33, %34 : vector<8x32xf32>
    %36 = math.tanh %35 : vector<8x32xf32>
    %37 = arith.mulf %30, %36 : vector<8x32xf32>
    %38 = arith.index_cast %14 : i32 to index
    %c0_15 = arith.constant 0 : index
    %39 = vector.load %arg9[%38, %c0_15] : memref<64x32xf32, #tpu.memory_space<vmem>>, vector<8x32xf32>
    tpu.vector_store %arg9[%38, %c0_15], %37 {strides = array<i32>} : memref<64x32xf32, #tpu.memory_space<vmem>>, vector<8x32xf32>,
    %c1_i32 = arith.constant 1 : i32
    %c8_i32_16 = arith.constant 8 : i32
    %40 = arith.muli %c1_i32, %c8_i32_16 : i32
    %41 = tpu.assume_multiple %40, 8 : i32
    %42 = arith.index_cast %41 : i32 to index
    %c0_17 = arith.constant 0 : index
    %43 = vector.load %arg8[%42, %c0_17] : memref<64x128xf32, #tpu.memory_space<vmem>>, vector<8x128xf32>
    %cst_18 = arith.constant dense<0.000000e+00> : vector<8x128xf32>
    %44 = tpu.matmul %37, %7, %cst_18 {dimension_numbers = #tpu.dot_dimension_numbers<[1], [0], [0], [1], [0, 0, 1, 1], [], []>} : vector<8x32xf32>, vector<32x128xf32>, vector<8x128xf32> -> vector<8x128xf32>
    %45 = arith.addf %43, %44 : vector<8x128xf32>
    %46 = arith.negf %45 : vector<8x128xf32>
    %47 = math.exp %46 : vector<8x128xf32>
    %cst_19 = arith.constant 1.000000e+00 : f32
    %48 = vector.broadcast %cst_19 : f32 to vector<8x128xf32>
    %49 = arith.addf %48, %47 : vector<8x128xf32>
    %50 = arith.divf %48, %49 : vector<8x128xf32>
    %51 = math.tanh %45 : vector<8x128xf32>
    %52 = arith.select %10, %50, %51 : vector<8x128xi1>, vector<8x128xf32>
    %53 = vector.extract_strided_slice %52 {offsets = [0, 0], sizes = [8, 32], strides = [1, 1]} : vector<8x128xf32> to vector<8x32xf32>
    %c96_i32_20 = arith.constant 96 : i32
    %54 = tpu.dynamic_rotate %52 by %c96_i32_20 dim 1 : vector<8x128xf32>, i32 -> vector<8x128xf32>
    %55 = vector.extract_strided_slice %54 {offsets = [0, 0], sizes = [8, 32], strides = [1, 1]} : vector<8x128xf32> to vector<8x32xf32>
    %c64_i32_21 = arith.constant 64 : i32
    %56 = tpu.dynamic_rotate %52 by %c64_i32_21 dim 1 : vector<8x128xf32>, i32 -> vector<8x128xf32>
    %57 = vector.extract_strided_slice %56 {offsets = [0, 0], sizes = [8, 32], strides = [1, 1]} : vector<8x128xf32> to vector<8x32xf32>
    %c32_i32_22 = arith.constant 32 : i32
    %58 = tpu.dynamic_rotate %52 by %c32_i32_22 dim 1 : vector<8x128xf32>, i32 -> vector<8x128xf32>
    %59 = vector.extract_strided_slice %58 {offsets = [0, 0], sizes = [8, 32], strides = [1, 1]} : vector<8x128xf32> to vector<8x32xf32>
    %60 = arith.mulf %55, %35 : vector<8x32xf32>
    %61 = arith.mulf %53, %59 : vector<8x32xf32>
    %62 = arith.addf %60, %61 : vector<8x32xf32>
    %63 = math.tanh %62 : vector<8x32xf32>
    %64 = arith.mulf %57, %63 : vector<8x32xf32>
    %65 = arith.index_cast %41 : i32 to index
    %c0_23 = arith.constant 0 : index
    %66 = vector.load %arg9[%65, %c0_23] : memref<64x32xf32, #tpu.memory_space<vmem>>, vector<8x32xf32>
    tpu.vector_store %arg9[%65, %c0_23], %64 {strides = array<i32>} : memref<64x32xf32, #tpu.memory_space<vmem>>, vector<8x32xf32>,
    %c2_i32 = arith.constant 2 : i32
    %c8_i32_24 = arith.constant 8 : i32
    %67 = arith.muli %c2_i32, %c8_i32_24 : i32
    %68 = tpu.assume_multiple %67, 8 : i32
    %69 = arith.index_cast %68 : i32 to index
    %c0_25 = arith.constant 0 : index
    %70 = vector.load %arg8[%69, %c0_25] : memref<64x128xf32, #tpu.memory_space<vmem>>, vector<8x128xf32>
    %cst_26 = arith.constant dense<0.000000e+00> : vector<8x128xf32>
    %71 = tpu.matmul %64, %7, %cst_26 {dimension_numbers = #tpu.dot_dimension_numbers<[1], [0], [0], [1], [0, 0, 1, 1], [], []>} : vector<8x32xf32>, vector<32x128xf32>, vector<8x128xf32> -> vector<8x128xf32>
    %72 = arith.addf %70, %71 : vector<8x128xf32>
    %73 = arith.negf %72 : vector<8x128xf32>
    %74 = math.exp %73 : vector<8x128xf32>
    %cst_27 = arith.constant 1.000000e+00 : f32
    %75 = vector.broadcast %cst_27 : f32 to vector<8x128xf32>
    %76 = arith.addf %75, %74 : vector<8x128xf32>
    %77 = arith.divf %75, %76 : vector<8x128xf32>
    %78 = math.tanh %72 : vector<8x128xf32>
    %79 = arith.select %10, %77, %78 : vector<8x128xi1>, vector<8x128xf32>
    %80 = vector.extract_strided_slice %79 {offsets = [0, 0], sizes = [8, 32], strides = [1, 1]} : vector<8x128xf32> to vector<8x32xf32>
    %c96_i32_28 = arith.constant 96 : i32
    %81 = tpu.dynamic_rotate %79 by %c96_i32_28 dim 1 : vector<8x128xf32>, i32 -> vector<8x128xf32>
    %82 = vector.extract_strided_slice %81 {offsets = [0, 0], sizes = [8, 32], strides = [1, 1]} : vector<8x128xf32> to vector<8x32xf32>
    %c64_i32_29 = arith.constant 64 : i32
    %83 = tpu.dynamic_rotate %79 by %c64_i32_29 dim 1 : vector<8x128xf32>, i32 -> vector<8x128xf32>
    %84 = vector.extract_strided_slice %83 {offsets = [0, 0], sizes = [8, 32], strides = [1, 1]} : vector<8x128xf32> to vector<8x32xf32>
    %c32_i32_30 = arith.constant 32 : i32
    %85 = tpu.dynamic_rotate %79 by %c32_i32_30 dim 1 : vector<8x128xf32>, i32 -> vector<8x128xf32>
    %86 = vector.extract_strided_slice %85 {offsets = [0, 0], sizes = [8, 32], strides = [1, 1]} : vector<8x128xf32> to vector<8x32xf32>
    %87 = arith.mulf %82, %62 : vector<8x32xf32>
    %88 = arith.mulf %80, %86 : vector<8x32xf32>
    %89 = arith.addf %87, %88 : vector<8x32xf32>
    %90 = math.tanh %89 : vector<8x32xf32>
    %91 = arith.mulf %84, %90 : vector<8x32xf32>
    %92 = arith.index_cast %68 : i32 to index
    %c0_31 = arith.constant 0 : index
    %93 = vector.load %arg9[%92, %c0_31] : memref<64x32xf32, #tpu.memory_space<vmem>>, vector<8x32xf32>
    tpu.vector_store %arg9[%92, %c0_31], %91 {strides = array<i32>} : memref<64x32xf32, #tpu.memory_space<vmem>>, vector<8x32xf32>,
    %c3_i32 = arith.constant 3 : i32
    %c8_i32_32 = arith.constant 8 : i32
    %94 = arith.muli %c3_i32, %c8_i32_32 : i32
    %95 = tpu.assume_multiple %94, 8 : i32
    %96 = arith.index_cast %95 : i32 to index
    %c0_33 = arith.constant 0 : index
    %97 = vector.load %arg8[%96, %c0_33] : memref<64x128xf32, #tpu.memory_space<vmem>>, vector<8x128xf32>
    %cst_34 = arith.constant dense<0.000000e+00> : vector<8x128xf32>
    %98 = tpu.matmul %91, %7, %cst_34 {dimension_numbers = #tpu.dot_dimension_numbers<[1], [0], [0], [1], [0, 0, 1, 1], [], []>} : vector<8x32xf32>, vector<32x128xf32>, vector<8x128xf32> -> vector<8x128xf32>
    %99 = arith.addf %97, %98 : vector<8x128xf32>
    %100 = arith.negf %99 : vector<8x128xf32>
    %101 = math.exp %100 : vector<8x128xf32>
    %cst_35 = arith.constant 1.000000e+00 : f32
    %102 = vector.broadcast %cst_35 : f32 to vector<8x128xf32>
    %103 = arith.addf %102, %101 : vector<8x128xf32>
    %104 = arith.divf %102, %103 : vector<8x128xf32>
    %105 = math.tanh %99 : vector<8x128xf32>
    %106 = arith.select %10, %104, %105 : vector<8x128xi1>, vector<8x128xf32>
    %107 = vector.extract_strided_slice %106 {offsets = [0, 0], sizes = [8, 32], strides = [1, 1]} : vector<8x128xf32> to vector<8x32xf32>
    %c96_i32_36 = arith.constant 96 : i32
    %108 = tpu.dynamic_rotate %106 by %c96_i32_36 dim 1 : vector<8x128xf32>, i32 -> vector<8x128xf32>
    %109 = vector.extract_strided_slice %108 {offsets = [0, 0], sizes = [8, 32], strides = [1, 1]} : vector<8x128xf32> to vector<8x32xf32>
    %c64_i32_37 = arith.constant 64 : i32
    %110 = tpu.dynamic_rotate %106 by %c64_i32_37 dim 1 : vector<8x128xf32>, i32 -> vector<8x128xf32>
    %111 = vector.extract_strided_slice %110 {offsets = [0, 0], sizes = [8, 32], strides = [1, 1]} : vector<8x128xf32> to vector<8x32xf32>
    %c32_i32_38 = arith.constant 32 : i32
    %112 = tpu.dynamic_rotate %106 by %c32_i32_38 dim 1 : vector<8x128xf32>, i32 -> vector<8x128xf32>
    %113 = vector.extract_strided_slice %112 {offsets = [0, 0], sizes = [8, 32], strides = [1, 1]} : vector<8x128xf32> to vector<8x32xf32>
    %114 = arith.mulf %109, %89 : vector<8x32xf32>
    %115 = arith.mulf %107, %113 : vector<8x32xf32>
    %116 = arith.addf %114, %115 : vector<8x32xf32>
    %117 = math.tanh %116 : vector<8x32xf32>
    %118 = arith.mulf %111, %117 : vector<8x32xf32>
    %119 = arith.index_cast %95 : i32 to index
    %c0_39 = arith.constant 0 : index
    %120 = vector.load %arg9[%119, %c0_39] : memref<64x32xf32, #tpu.memory_space<vmem>>, vector<8x32xf32>
    tpu.vector_store %arg9[%119, %c0_39], %118 {strides = array<i32>} : memref<64x32xf32, #tpu.memory_space<vmem>>, vector<8x32xf32>,
    %c4_i32 = arith.constant 4 : i32
    %c8_i32_40 = arith.constant 8 : i32
    %121 = arith.muli %c4_i32, %c8_i32_40 : i32
    %122 = tpu.assume_multiple %121, 8 : i32
    %123 = arith.index_cast %122 : i32 to index
    %c0_41 = arith.constant 0 : index
    %124 = vector.load %arg8[%123, %c0_41] : memref<64x128xf32, #tpu.memory_space<vmem>>, vector<8x128xf32>
    %cst_42 = arith.constant dense<0.000000e+00> : vector<8x128xf32>
    %125 = tpu.matmul %118, %7, %cst_42 {dimension_numbers = #tpu.dot_dimension_numbers<[1], [0], [0], [1], [0, 0, 1, 1], [], []>} : vector<8x32xf32>, vector<32x128xf32>, vector<8x128xf32> -> vector<8x128xf32>
    %126 = arith.addf %124, %125 : vector<8x128xf32>
    %127 = arith.negf %126 : vector<8x128xf32>
    %128 = math.exp %127 : vector<8x128xf32>
    %cst_43 = arith.constant 1.000000e+00 : f32
    %129 = vector.broadcast %cst_43 : f32 to vector<8x128xf32>
    %130 = arith.addf %129, %128 : vector<8x128xf32>
    %131 = arith.divf %129, %130 : vector<8x128xf32>
    %132 = math.tanh %126 : vector<8x128xf32>
    %133 = arith.select %10, %131, %132 : vector<8x128xi1>, vector<8x128xf32>
    %134 = vector.extract_strided_slice %133 {offsets = [0, 0], sizes = [8, 32], strides = [1, 1]} : vector<8x128xf32> to vector<8x32xf32>
    %c96_i32_44 = arith.constant 96 : i32
    %135 = tpu.dynamic_rotate %133 by %c96_i32_44 dim 1 : vector<8x128xf32>, i32 -> vector<8x128xf32>
    %136 = vector.extract_strided_slice %135 {offsets = [0, 0], sizes = [8, 32], strides = [1, 1]} : vector<8x128xf32> to vector<8x32xf32>
    %c64_i32_45 = arith.constant 64 : i32
    %137 = tpu.dynamic_rotate %133 by %c64_i32_45 dim 1 : vector<8x128xf32>, i32 -> vector<8x128xf32>
    %138 = vector.extract_strided_slice %137 {offsets = [0, 0], sizes = [8, 32], strides = [1, 1]} : vector<8x128xf32> to vector<8x32xf32>
    %c32_i32_46 = arith.constant 32 : i32
    %139 = tpu.dynamic_rotate %133 by %c32_i32_46 dim 1 : vector<8x128xf32>, i32 -> vector<8x128xf32>
    %140 = vector.extract_strided_slice %139 {offsets = [0, 0], sizes = [8, 32], strides = [1, 1]} : vector<8x128xf32> to vector<8x32xf32>
    %141 = arith.mulf %136, %116 : vector<8x32xf32>
    %142 = arith.mulf %134, %140 : vector<8x32xf32>
    %143 = arith.addf %141, %142 : vector<8x32xf32>
    %144 = math.tanh %143 : vector<8x32xf32>
    %145 = arith.mulf %138, %144 : vector<8x32xf32>
    %146 = arith.index_cast %122 : i32 to index
    %c0_47 = arith.constant 0 : index
    %147 = vector.load %arg9[%146, %c0_47] : memref<64x32xf32, #tpu.memory_space<vmem>>, vector<8x32xf32>
    tpu.vector_store %arg9[%146, %c0_47], %145 {strides = array<i32>} : memref<64x32xf32, #tpu.memory_space<vmem>>, vector<8x32xf32>,
    %c5_i32 = arith.constant 5 : i32
    %c8_i32_48 = arith.constant 8 : i32
    %148 = arith.muli %c5_i32, %c8_i32_48 : i32
    %149 = tpu.assume_multiple %148, 8 : i32
    %150 = arith.index_cast %149 : i32 to index
    %c0_49 = arith.constant 0 : index
    %151 = vector.load %arg8[%150, %c0_49] : memref<64x128xf32, #tpu.memory_space<vmem>>, vector<8x128xf32>
    %cst_50 = arith.constant dense<0.000000e+00> : vector<8x128xf32>
    %152 = tpu.matmul %145, %7, %cst_50 {dimension_numbers = #tpu.dot_dimension_numbers<[1], [0], [0], [1], [0, 0, 1, 1], [], []>} : vector<8x32xf32>, vector<32x128xf32>, vector<8x128xf32> -> vector<8x128xf32>
    %153 = arith.addf %151, %152 : vector<8x128xf32>
    %154 = arith.negf %153 : vector<8x128xf32>
    %155 = math.exp %154 : vector<8x128xf32>
    %cst_51 = arith.constant 1.000000e+00 : f32
    %156 = vector.broadcast %cst_51 : f32 to vector<8x128xf32>
    %157 = arith.addf %156, %155 : vector<8x128xf32>
    %158 = arith.divf %156, %157 : vector<8x128xf32>
    %159 = math.tanh %153 : vector<8x128xf32>
    %160 = arith.select %10, %158, %159 : vector<8x128xi1>, vector<8x128xf32>
    %161 = vector.extract_strided_slice %160 {offsets = [0, 0], sizes = [8, 32], strides = [1, 1]} : vector<8x128xf32> to vector<8x32xf32>
    %c96_i32_52 = arith.constant 96 : i32
    %162 = tpu.dynamic_rotate %160 by %c96_i32_52 dim 1 : vector<8x128xf32>, i32 -> vector<8x128xf32>
    %163 = vector.extract_strided_slice %162 {offsets = [0, 0], sizes = [8, 32], strides = [1, 1]} : vector<8x128xf32> to vector<8x32xf32>
    %c64_i32_53 = arith.constant 64 : i32
    %164 = tpu.dynamic_rotate %160 by %c64_i32_53 dim 1 : vector<8x128xf32>, i32 -> vector<8x128xf32>
    %165 = vector.extract_strided_slice %164 {offsets = [0, 0], sizes = [8, 32], strides = [1, 1]} : vector<8x128xf32> to vector<8x32xf32>
    %c32_i32_54 = arith.constant 32 : i32
    %166 = tpu.dynamic_rotate %160 by %c32_i32_54 dim 1 : vector<8x128xf32>, i32 -> vector<8x128xf32>
    %167 = vector.extract_strided_slice %166 {offsets = [0, 0], sizes = [8, 32], strides = [1, 1]} : vector<8x128xf32> to vector<8x32xf32>
    %168 = arith.mulf %163, %143 : vector<8x32xf32>
    %169 = arith.mulf %161, %167 : vector<8x32xf32>
    %170 = arith.addf %168, %169 : vector<8x32xf32>
    %171 = math.tanh %170 : vector<8x32xf32>
    %172 = arith.mulf %165, %171 : vector<8x32xf32>
    %173 = arith.index_cast %149 : i32 to index
    %c0_55 = arith.constant 0 : index
    %174 = vector.load %arg9[%173, %c0_55] : memref<64x32xf32, #tpu.memory_space<vmem>>, vector<8x32xf32>
    tpu.vector_store %arg9[%173, %c0_55], %172 {strides = array<i32>} : memref<64x32xf32, #tpu.memory_space<vmem>>, vector<8x32xf32>,
    %c6_i32 = arith.constant 6 : i32
    %c8_i32_56 = arith.constant 8 : i32
    %175 = arith.muli %c6_i32, %c8_i32_56 : i32
    %176 = tpu.assume_multiple %175, 8 : i32
    %177 = arith.index_cast %176 : i32 to index
    %c0_57 = arith.constant 0 : index
    %178 = vector.load %arg8[%177, %c0_57] : memref<64x128xf32, #tpu.memory_space<vmem>>, vector<8x128xf32>
    %cst_58 = arith.constant dense<0.000000e+00> : vector<8x128xf32>
    %179 = tpu.matmul %172, %7, %cst_58 {dimension_numbers = #tpu.dot_dimension_numbers<[1], [0], [0], [1], [0, 0, 1, 1], [], []>} : vector<8x32xf32>, vector<32x128xf32>, vector<8x128xf32> -> vector<8x128xf32>
    %180 = arith.addf %178, %179 : vector<8x128xf32>
    %181 = arith.negf %180 : vector<8x128xf32>
    %182 = math.exp %181 : vector<8x128xf32>
    %cst_59 = arith.constant 1.000000e+00 : f32
    %183 = vector.broadcast %cst_59 : f32 to vector<8x128xf32>
    %184 = arith.addf %183, %182 : vector<8x128xf32>
    %185 = arith.divf %183, %184 : vector<8x128xf32>
    %186 = math.tanh %180 : vector<8x128xf32>
    %187 = arith.select %10, %185, %186 : vector<8x128xi1>, vector<8x128xf32>
    %188 = vector.extract_strided_slice %187 {offsets = [0, 0], sizes = [8, 32], strides = [1, 1]} : vector<8x128xf32> to vector<8x32xf32>
    %c96_i32_60 = arith.constant 96 : i32
    %189 = tpu.dynamic_rotate %187 by %c96_i32_60 dim 1 : vector<8x128xf32>, i32 -> vector<8x128xf32>
    %190 = vector.extract_strided_slice %189 {offsets = [0, 0], sizes = [8, 32], strides = [1, 1]} : vector<8x128xf32> to vector<8x32xf32>
    %c64_i32_61 = arith.constant 64 : i32
    %191 = tpu.dynamic_rotate %187 by %c64_i32_61 dim 1 : vector<8x128xf32>, i32 -> vector<8x128xf32>
    %192 = vector.extract_strided_slice %191 {offsets = [0, 0], sizes = [8, 32], strides = [1, 1]} : vector<8x128xf32> to vector<8x32xf32>
    %c32_i32_62 = arith.constant 32 : i32
    %193 = tpu.dynamic_rotate %187 by %c32_i32_62 dim 1 : vector<8x128xf32>, i32 -> vector<8x128xf32>
    %194 = vector.extract_strided_slice %193 {offsets = [0, 0], sizes = [8, 32], strides = [1, 1]} : vector<8x128xf32> to vector<8x32xf32>
    %195 = arith.mulf %190, %170 : vector<8x32xf32>
    %196 = arith.mulf %188, %194 : vector<8x32xf32>
    %197 = arith.addf %195, %196 : vector<8x32xf32>
    %198 = math.tanh %197 : vector<8x32xf32>
    %199 = arith.mulf %192, %198 : vector<8x32xf32>
    %200 = arith.index_cast %176 : i32 to index
    %c0_63 = arith.constant 0 : index
    %201 = vector.load %arg9[%200, %c0_63] : memref<64x32xf32, #tpu.memory_space<vmem>>, vector<8x32xf32>
    tpu.vector_store %arg9[%200, %c0_63], %199 {strides = array<i32>} : memref<64x32xf32, #tpu.memory_space<vmem>>, vector<8x32xf32>,
    %c7_i32 = arith.constant 7 : i32
    %c8_i32_64 = arith.constant 8 : i32
    %202 = arith.muli %c7_i32, %c8_i32_64 : i32
    %203 = tpu.assume_multiple %202, 8 : i32
    %204 = arith.index_cast %203 : i32 to index
    %c0_65 = arith.constant 0 : index
    %205 = vector.load %arg8[%204, %c0_65] : memref<64x128xf32, #tpu.memory_space<vmem>>, vector<8x128xf32>
    %cst_66 = arith.constant dense<0.000000e+00> : vector<8x128xf32>
    %206 = tpu.matmul %199, %7, %cst_66 {dimension_numbers = #tpu.dot_dimension_numbers<[1], [0], [0], [1], [0, 0, 1, 1], [], []>} : vector<8x32xf32>, vector<32x128xf32>, vector<8x128xf32> -> vector<8x128xf32>
    %207 = arith.addf %205, %206 : vector<8x128xf32>
    %208 = arith.negf %207 : vector<8x128xf32>
    %209 = math.exp %208 : vector<8x128xf32>
    %cst_67 = arith.constant 1.000000e+00 : f32
    %210 = vector.broadcast %cst_67 : f32 to vector<8x128xf32>
    %211 = arith.addf %210, %209 : vector<8x128xf32>
    %212 = arith.divf %210, %211 : vector<8x128xf32>
    %213 = math.tanh %207 : vector<8x128xf32>
    %214 = arith.select %10, %212, %213 : vector<8x128xi1>, vector<8x128xf32>
    %215 = vector.extract_strided_slice %214 {offsets = [0, 0], sizes = [8, 32], strides = [1, 1]} : vector<8x128xf32> to vector<8x32xf32>
    %c96_i32_68 = arith.constant 96 : i32
    %216 = tpu.dynamic_rotate %214 by %c96_i32_68 dim 1 : vector<8x128xf32>, i32 -> vector<8x128xf32>
    %217 = vector.extract_strided_slice %216 {offsets = [0, 0], sizes = [8, 32], strides = [1, 1]} : vector<8x128xf32> to vector<8x32xf32>
    %c64_i32_69 = arith.constant 64 : i32
    %218 = tpu.dynamic_rotate %214 by %c64_i32_69 dim 1 : vector<8x128xf32>, i32 -> vector<8x128xf32>
    %219 = vector.extract_strided_slice %218 {offsets = [0, 0], sizes = [8, 32], strides = [1, 1]} : vector<8x128xf32> to vector<8x32xf32>
    %c32_i32_70 = arith.constant 32 : i32
    %220 = tpu.dynamic_rotate %214 by %c32_i32_70 dim 1 : vector<8x128xf32>, i32 -> vector<8x128xf32>
    %221 = vector.extract_strided_slice %220 {offsets = [0, 0], sizes = [8, 32], strides = [1, 1]} : vector<8x128xf32> to vector<8x32xf32>
    %222 = arith.mulf %217, %197 : vector<8x32xf32>
    %223 = arith.mulf %215, %221 : vector<8x32xf32>
    %224 = arith.addf %222, %223 : vector<8x32xf32>
    %225 = math.tanh %224 : vector<8x32xf32>
    %226 = arith.mulf %219, %225 : vector<8x32xf32>
    %227 = arith.index_cast %203 : i32 to index
    %c0_71 = arith.constant 0 : index
    %228 = vector.load %arg9[%227, %c0_71] : memref<64x32xf32, #tpu.memory_space<vmem>>, vector<8x32xf32>
    tpu.vector_store %arg9[%227, %c0_71], %226 {strides = array<i32>} : memref<64x32xf32, #tpu.memory_space<vmem>>, vector<8x32xf32>,
    %c8_i32_72 = arith.constant 8 : i32
    %c0_73 = arith.constant 0 : index
    %c0_74 = arith.constant 0 : index
    %229 = vector.load %arg5[%c0_73, %c0_74] : memref<1x32xf32, #tpu.memory_space<vmem>>, vector<1x32xf32>
    %c0_75 = arith.constant 0 : index
    %c0_76 = arith.constant 0 : index
    %230 = vector.load %arg9[%c0_75, %c0_76] : memref<64x32xf32, #tpu.memory_space<vmem>>, vector<64x32xf32>
    %cst_77 = arith.constant dense<0.000000e+00> : vector<1x64xf32>
    %231 = tpu.matmul %229, %230, %cst_77 {dimension_numbers = #tpu.dot_dimension_numbers<[1], [1], [0], [0], [0, 0, 1, 0], [], []>} : vector<1x32xf32>, vector<64x32xf32>, vector<1x64xf32> -> vector<1x64xf32>
    %c0_78 = arith.constant 0 : index
    %c0_79 = arith.constant 0 : index
    %232 = vector.load %arg1[%c0_78, %c0_79] : memref<1x64xf32, #tpu.memory_space<vmem>>, vector<1x64xf32>
    %233 = arith.addf %232, %231 : vector<1x64xf32>
    %c0_80 = arith.constant 0 : index
    %c0_81 = arith.constant 0 : index
    %234 = vector.load %arg6[%c0_80, %c0_81] : memref<1x1xf32, #tpu.memory_space<vmem>>, vector<1x1xf32>
    %235 = vector.broadcast %234 : vector<1x1xf32> to vector<1x64xf32>
    %236 = arith.addf %233, %235 : vector<1x64xf32>
    %c0_82 = arith.constant 0 : index
    %c0_83 = arith.constant 0 : index
    %237 = vector.load %arg7[%c0_82, %c0_83] : memref<1x64xf32, #tpu.memory_space<vmem>>, vector<1x64xf32>
    tpu.vector_store %arg7[%c0_82, %c0_83], %236 {strides = array<i32>} : memref<1x64xf32, #tpu.memory_space<vmem>>, vector<1x64xf32>,
    return
  }
}

</mosaic_0001>

<bundles_post_ra>
// kernel: tpu_custom_call.1
= control target key start
LH: loop header
LB: loop body
LE: loop exit
PB: predicated region body
PF: predicated region fallthrough
CT: control target
= control target key end

     0   :  { %s1749_s0 = inlined_call_operand.vmem [shape: f32[64,4], index: 0, kind: input, shape index: {}]   ;;  %s1750_s1 = inlined_call_operand.vmem [shape: f32[1,64], index: 1, kind: input, shape index: {}]   ;;  %s1751_s2 = inlined_call_operand.vmem [shape: f32[4,128], index: 2, kind: input, shape index: {}]   ;;  %s1752_s3 = inlined_call_operand.vmem [shape: f32[32,128], index: 3, kind: input, shape index: {}]   ;;  %s1753_s4 = inlined_call_operand.vmem [shape: f32[1,128], index: 4, kind: input, shape index: {}]   ;;  %s1754_s5 = inlined_call_operand.vmem [shape: f32[1,32], index: 5, kind: input, shape index: {}]   ;;  %s1755_s6 = inlined_call_operand.<no memory space> [shape: f32[1,1], index: 6, kind: input, shape index: {}]   ;;  %s1756_s7 = inlined_call_operand.hbm [shape: f32[1,64], index: 7, kind: output, shape index: {}]  }
   0x1   :  { %v12_v0 = vstv %s1755_s6 }
   0x2   :  { %13 = vst [vmem:[#allocation4] sm:$0x1] %v12_v0 }
   0x3   :  { %v37_v1 = vld [vmem:[%s1751_s2] sm:$0xf]  ;;  %vm70_vm0 = vcmask 1043456   ;;  %vm45_vm1 = vcmask 31744   ;;  %v30_v3 = vld [vmem:[%s1749_s0 + $0x8] sm:$0xff]  ;;  %v31_v6 = vld [vmem:[%s1749_s0 + $0x10] sm:$0xff] }
   0x4   :  { %v29_v2 = vld [vmem:[%s1749_s0] sm:$0xff]  ;;  %1196 = vmatprep.subr.msk.mxu1 %vm70_vm0, %v37_v1  ;;  %v188_v5 = vld [vmem:[%s1752_s3 + $0x8] sm:$0xff]  ;;  %v1478_v8 = vmov 0.0|0.0   ;;  %v189_v9 = vld [vmem:[%s1752_s3 + $0x10] sm:$0xff] }
   0x5   :  { %1198 = vmatprep.mubr.msk.f32.mxu1 %vm45_vm1, %v29_v2  ;;  %v187_v4 = vld [vmem:[%s1752_s3] sm:$0xff]  ;;  %1197 = vmatpush3.msk.msra.mxu1 %vm70_vm0, %v37_v1  ;;  %v190_v10 = vld [vmem:[%s1752_s3 + $0x18] sm:$0xff] }
   0x6   :  { %v1548_v7 = vpack.c.bf16 %v188_v5, %v187_v4  ;;  %1329 = vmatprep.subr.bf16.mxu0 %v1478_v8  ;;  %1199 = vmatmul.mubr.msk.f32.vlgmr.msra.gmra.mrb[0].mxu1 %vm45_vm1, %v30_v3  ;;  %v32_v11 = vld [vmem:[%s1749_s0 + $0x18] sm:$0xff]  ;;  %v1564_v12 = vpack.c.bf16 %v190_v10, %v189_v9 }
   0x7   :  { %1317 = vmatprep.subr.bf16.mxu1 %v1478_v8  ;;  %1201 = vmatprep.mubr.msk.f32.mxu1 %vm45_vm1, %v31_v6 }
   0x8   :  { %1319 = vmatpush3.bf16.msra.mxu1 %v1548_v7 }
   0x9   :  { %14 = vsyncpa [#allocation6], 0  ;;  %v33_v13 = vld [vmem:[%s1749_s0 + $0x20] sm:$0xff]  ;;  %1320 = vmatprep.subr.bf16.mxu1 %v1478_v8  ;;  %1331 = vmatpush3.bf16.msra.mxu0 %v1548_v7  ;;  %vm1479_vm2 = vmmov 0   ;;  %v1480_v14 = vmov 0.0   ;;  %v34_v15 = vld [vmem:[%s1749_s0 + $0x28] sm:$0xff]  ;;  %v191_v41 = vlaneseq }
   0xa   :  { %1332 = vmatprep.subr.bf16.mxu0 %v1478_v8  ;;  %1240 = vmatprep.mubr.msk.f32.mxu0 %vm1479_vm2, %v1480_v14  ;;  %v35_v16 = vld [vmem:[%s1749_s0 + $0x30] sm:$0xff]  ;;  %v36_v17 = vld [vmem:[%s1749_s0 + $0x38] sm:$0xff]  ;;  %v1104_v18 = vld [vmem:[%s1753_s4] ss:$0 sm:$0xff]  ;;  %s1481_s4 = smov 64   ;;  %s1482_s27 = smov 96  }
   0xb   :  { %1202 = vmatmul.mubr.msk.f32.gmra.mrb[2].mxu1 %vm45_vm1, %v32_v11  ;;  %v1617_v42 = vand.u32 127, %v191_v41  ;;  %s1483_s28 = smov 32   ;;  %vm195_vm4 = vcmask 261120   ;;  %s1485_s6 = smov [#allocation5]   ;;  %vm1088_vm6 = vcmask 516096  }
   0xc   :  { %1204 = vmatprep.mubr.msk.f32.mxu1 %vm45_vm1, %v33_v13  ;;  %1322 = vmatpush3.bf16.msra.mxu1 %v1564_v12  ;;  %vm1695_vm5 = vmpackc.low %vm195_vm4, %vm195_vm4  ;;  %s1096_s10 = sshll.u32 %s1485_s6, 4  ;;  %s1097_s10 = int_to_ptr.vmem [resolvable:$true] %s1096_s10 }
   0xd   :  { %1323 = vmatprep.subr.bf16.mxu1 %v1478_v8  ;;  %1334 = vmatpush3.bf16.msra.mxu0 %v1564_v12  ;;  %vm193_vm3 = vcmp.lt.s32.totalorder %v1617_v42, 96  ;;  %s1458_s11 = scalar_lea.vmem %s1097_s10, 32  ;;  %p1459_p1 = scmp.lt.s32.totalorder %s1097_s10, %s1097_s10 }
   0xe   :  { %1341 = vmatprep.subr.bf16.mxu0 %v1478_v8 }
   0xf   :  { %1205 = vmatmul.mubr.msk.f32.gmra.mrb[4].mxu1 %vm45_vm1, %v34_v15 }
  0x10   :  { %1207 = vmatprep.mubr.msk.f32.mxu1 %vm45_vm1, %v35_v16 }
  0x13   :  { %1208 = vmatmul.mubr.msk.f32.gmra.mrb[6].mxu1 %vm45_vm1, %v36_v17 }
  0x14   :  { %1218 = vmatprep.mubr.msk.f32.mxu1 %vm1479_vm2, %v1480_v14 }
  0x17   :  { %1219 = vmatmul.mubr.f32.vlgmr.msra.gmra.mrb[8].mxu1 %v1480_v14 }
  0x18   :  { %1325 = vmatpush3.bf16.msra.mxu1 %v1548_v7  ;;  %1229 = vmatprep.mubr.msk.f32.mxu1 %vm1479_vm2, %v1480_v14 }
  0x19   :  { %1326 = vmatprep.subr.bf16.mxu1 %v1478_v8 }
  0x1c   :  { %1328 = vmatpush3.bf16.msra.mxu1 %v1564_v12 }
  0x1d   :  { %1335 = vmatprep.subr.bf16.mxu1 %v1478_v8 }
  0xd9   :  { %v1200_v19 = vpop.f32.mrb[0].mxu1 }
  0xda   :  { %v146_v20 = vadd.f32 %v1200_v19, %v1104_v18  ;;  %v140_v21 = vpop.f32.mrb[1].mxu1 }
  0xdb   :  { %v141_v34 = vadd.f32 %v1104_v18, %v140_v21 }
  0xde   :  { %v1203_v22 = vpop.f32.mrb[2].mxu1 }
  0xdf   :  { %v1604_v23 = vadd.f32 %v1203_v22, %v1104_v18  ;;  %v150_v24 = vpop.f32.mrb[3].mxu1 }
  0xe0   :  { %v1606_v25 = vadd.f32 %v1104_v18, %v150_v24 }
  0xe2   :  { %v1206_v26 = vpop.f32.mrb[4].mxu1 }
  0xe3   :  { %v1608_v27 = vadd.f32 %v1206_v26, %v1104_v18  ;;  %v160_v28 = vpop.f32.mrb[5].mxu1 }
  0xe4   :  { %v1610_v29 = vadd.f32 %v1104_v18, %v160_v28 }
  0xe6   :  { %v1209_v30 = vpop.f32.mrb[6].mxu1 }
  0xe7   :  { %v1612_v31 = vadd.f32 %v1209_v30, %v1104_v18  ;;  %v170_v32 = vpop.f32.mrb[7].mxu1 }
  0xe8   :  { %v1614_v33 = vadd.f32 %v1104_v18, %v170_v32 }
  0xea   :  { %v265_v35 = vpop.f32.mrb[8].mxu1 }
  0xeb   :  { %v269_v36 = vadd.f32 %v265_v35, %v141_v34  ;;  %v1220_v37 = vpop.f32.mrb[9].mxu1 }
  0xed   :  { %v1114_v38 = vmul.f32 -1.442695, %v269_v36 }
  0xef   :  { %1390 = vpow2.f32 %v1114_v38 }
  0xf0   :  { %1392 = vtanh.f32 %v269_v36 }
  0xf9   :  { %v1391_v39 = vpop.eup %1390 }
  0xfa   :  { %v273_v40 = vadd.f32 1.0, %v1391_v39  ;;  %v1393_v43 = vpop.eup %1392 }
  0xfc   :  { %1394 = vrcp.f32 %v273_v40 }
 0x106   :  { %v1395_v44 = vpop.eup %1394 }
 0x107   :  { %v277_v45 = vsel %vm193_vm3, %v1395_v44, %v1393_v43 }
 0x108   :  { %280 = vrot.lane.b32.xlu1 %v277_v45, %s1481_s4  ;;  %278 = vrot.lane.b32.xlu0 %v277_v45, %s1482_s27 }
 0x10c   :  { %282 = vrot.lane.b32.xlu0 %v277_v45, %s1483_s28 }
 0x17a   :  { %v279_v46 = vpop.permute.xlu0 %278  ;;  %v281_v52 = vpop.permute.xlu1 %280 }
 0x17b   :  { %v284_v48 = vmul.f32 0.0, %v279_v46 }
 0x17e   :  { %v283_v47 = vpop.permute.xlu0 %282 }
 0x17f   :  { %v285_v49 = vmul.f32 %v283_v47, %v277_v45 }
 0x181   :  { %v286_v50 = vadd.f32 %v285_v49, %v284_v48 }
 0x183   :  { %1396 = vtanh.f32 %v286_v50 }
 0x18d   :  { %v1397_v51 = vpop.eup %1396 }
 0x18e   :  { %v288_v53 = vmul.f32 %v1397_v51, %v281_v52 }
 0x190   :  { %289 = vst.msk [vmem:[#allocation3] sm:$0xff] %vm195_vm4, %v288_v53  ;;  %1230 = vmatmul.mubr.msk.f32.vlgmr.msra.gmra.mrb[10].mxu1 %vm195_vm4, %v288_v53 }
 0x191   :  { %1337 = vmatpush3.bf16.msra.mxu1 %v1548_v7  ;;  %1251 = vmatprep.mubr.msk.f32.mxu1 %vm1479_vm2, %v1480_v14 }
 0x192   :  { %1338 = vmatprep.subr.bf16.mxu1 %v1478_v8 }
 0x195   :  { %1340 = vmatpush3.bf16.msra.mxu1 %v1564_v12 }
 0x196   :  { %1347 = vmatprep.subr.bf16.mxu1 %v1478_v8 }
 0x263   :  { %v361_v54 = vpop.f32.mrb[10].mxu1 }
 0x264   :  { %v365_v55 = vadd.f32 %v361_v54, %v146_v20  ;;  %v1231_v56 = vpop.f32.mrb[11].mxu1 }
 0x266   :  { %v1116_v57 = vmul.f32 -1.442695, %v365_v55 }
 0x268   :  { %1398 = vpow2.f32 %v1116_v57 }
 0x269   :  { %1400 = vtanh.f32 %v365_v55 }
 0x272   :  { %v1399_v58 = vpop.eup %1398 }
 0x273   :  { %v369_v59 = vadd.f32 1.0, %v1399_v58  ;;  %v1401_v60 = vpop.eup %1400 }
 0x275   :  { %1402 = vrcp.f32 %v369_v59 }
 0x27f   :  { %v1403_v61 = vpop.eup %1402 }
 0x280   :  { %v373_v62 = vsel %vm193_vm3, %v1403_v61, %v1401_v60 }
 0x281   :  { %378 = vrot.lane.b32.xlu0 %v373_v62, %s1483_s28  ;;  %374 = vrot.lane.b32.xlu1 %v373_v62, %s1482_s27 }
 0x285   :  { %376 = vrot.lane.b32.xlu1 %v373_v62, %s1481_s4 }
 0x2f3   :  { %v379_v63 = vpop.permute.xlu0 %378  ;;  %v375_v0 = vpop.permute.xlu1 %374 }
 0x2f4   :  { %v381_v1 = vmul.f32 %v379_v63, %v373_v62  ;;  %v380_v2 = vmul.f32 %v375_v0, %v286_v50 }
 0x2f6   :  { %v382_v3 = vadd.f32 %v381_v1, %v380_v2 }
 0x2f7   :  { %v377_v5 = vpop.permute.xlu1 %376 }
 0x2f8   :  { %1404 = vtanh.f32 %v382_v3 }
 0x302   :  { %v1405_v4 = vpop.eup %1404 }
 0x303   :  { %v384_v6 = vmul.f32 %v1405_v4, %v377_v5 }
 0x305   :  { %386 = vst.msk [vmem:[#allocation3 + $0x8] sm:$0xff] %vm195_vm4, %v384_v6  ;;  %1241 = vmatmul.mubr.msk.f32.vlgmr.msra.gmra.mrb[0].mxu0 %vm195_vm4, %v384_v6 }
 0x306   :  { %1343 = vmatpush3.bf16.msra.mxu0 %v1548_v7  ;;  %1262 = vmatprep.mubr.msk.f32.mxu0 %vm1479_vm2, %v1480_v14 }
 0x307   :  { %1344 = vmatprep.subr.bf16.mxu0 %v1478_v8 }
 0x30a   :  { %1346 = vmatpush3.bf16.msra.mxu0 %v1564_v12 }
 0x30b   :  { %1353 = vmatprep.subr.bf16.mxu0 %v1478_v8 }
 0x3d8   :  { %v458_v9 = vpop.f32.mrb[0].mxu0 }
 0x3d9   :  { %v462_v10 = vadd.f32 %v458_v9, %v1606_v25  ;;  %v1242_v11 = vpop.f32.mrb[1].mxu0 }
 0x3db   :  { %v1118_v13 = vmul.f32 -1.442695, %v462_v10 }
 0x3dd   :  { %1406 = vpow2.f32 %v1118_v13 }
 0x3de   :  { %1408 = vtanh.f32 %v462_v10 }
 0x3e7   :  { %v1407_v15 = vpop.eup %1406 }
 0x3e8   :  { %v466_v16 = vadd.f32 1.0, %v1407_v15  ;;  %v1409_v17 = vpop.eup %1408 }
 0x3ea   :  { %1410 = vrcp.f32 %v466_v16 }
 0x3f4   :  { %v1411_v18 = vpop.eup %1410 }
 0x3f5   :  { %v470_v19 = vsel %vm193_vm3, %v1411_v18, %v1409_v17  ;;  %v971_v18 = vld [vmem:[#allocation3 + $0x8] sm:$0xff] }
 0x3f6   :  { %475 = vrot.lane.b32.xlu1 %v470_v19, %s1483_s28  ;;  %471 = vrot.lane.b32.xlu0 %v470_v19, %s1482_s27 }
 0x3fa   :  { %473 = vrot.lane.b32.xlu0 %v470_v19, %s1481_s4 }
 0x468   :  { %v476_v20 = vpop.permute.xlu1 %475  ;;  %v472_v21 = vpop.permute.xlu0 %471 }
 0x469   :  { %v478_v22 = vmul.f32 %v476_v20, %v470_v19  ;;  %v477_v24 = vmul.f32 %v472_v21, %v382_v3 }
 0x46b   :  { %v479_v25 = vadd.f32 %v478_v22, %v477_v24  ;;  %v970_v22 = vld [vmem:[#allocation3] sm:$0xff] }
 0x46c   :  { %v474_v28 = vpop.permute.xlu0 %473 }
 0x46d   :  { %1412 = vtanh.f32 %v479_v25 }
 0x477   :  { %v1413_v26 = vpop.eup %1412 }
 0x478   :  { %v481_v30 = vmul.f32 %v1413_v26, %v474_v28 }
 0x47a   :  { %483 = vst.msk [vmem:[#allocation3 + $0x10] sm:$0xff] %vm195_vm4, %v481_v30  ;;  %1252 = vmatmul.mubr.msk.f32.vlgmr.msra.gmra.mrb[12].mxu1 %vm195_vm4, %v481_v30 }
 0x47b   :  { %1349 = vmatpush3.bf16.msra.mxu1 %v1548_v7  ;;  %1273 = vmatprep.mubr.msk.f32.mxu1 %vm1479_vm2, %v1480_v14 }
 0x47c   :  { %1350 = vmatprep.subr.bf16.mxu1 %v1478_v8 }
 0x47f   :  { %1352 = vmatpush3.bf16.msra.mxu1 %v1564_v12 }
 0x480   :  { %1359 = vmatprep.subr.bf16.mxu1 %v1478_v8 }
 0x481   :  { %v972_v28 = vld [vmem:[#allocation3 + $0x10] sm:$0xff] }
 0x54d   :  { %v555_v32 = vpop.f32.mrb[12].mxu1 }
 0x54e   :  { %v559_v34 = vadd.f32 %v555_v32, %v1604_v23  ;;  %v1253_v35 = vpop.f32.mrb[13].mxu1 }
 0x550   :  { %v1120_v36 = vmul.f32 -1.442695, %v559_v34 }
 0x552   :  { %1414 = vpow2.f32 %v1120_v36 }
 0x553   :  { %1416 = vtanh.f32 %v559_v34 }
 0x55c   :  { %v1415_v37 = vpop.eup %1414 }
 0x55d   :  { %v563_v38 = vadd.f32 1.0, %v1415_v37  ;;  %v1417_v39 = vpop.eup %1416 }
 0x55f   :  { %1418 = vrcp.f32 %v563_v38 }
 0x569   :  { %v1419_v40 = vpop.eup %1418 }
 0x56a   :  { %v567_v43 = vsel %vm193_vm3, %v1419_v40, %v1417_v39 }
 0x56b   :  { %572 = vrot.lane.b32.xlu0 %v567_v43, %s1483_s28  ;;  %568 = vrot.lane.b32.xlu1 %v567_v43, %s1482_s27 }
 0x56f   :  { %570 = vrot.lane.b32.xlu1 %v567_v43, %s1481_s4 }
 0x5dd   :  { %v573_v44 = vpop.permute.xlu0 %572  ;;  %v569_v23 = vpop.permute.xlu1 %568 }
 0x5de   :  { %v575_v45 = vmul.f32 %v573_v44, %v567_v43  ;;  %v574_v46 = vmul.f32 %v569_v23, %v479_v25  ;;  %v1366_v25 = vpack.c.bf16 %v971_v18, %v970_v22 }
 0x5e0   :  { %v576_v47 = vadd.f32 %v575_v45, %v574_v46 }
 0x5e1   :  { %v571_v49 = vpop.permute.xlu1 %570 }
 0x5e2   :  { %1420 = vtanh.f32 %v576_v47 }
 0x5ec   :  { %v1421_v48 = vpop.eup %1420 }
 0x5ed   :  { %v578_v50 = vmul.f32 %v1421_v48, %v571_v49 }
 0x5ef   :  { %580 = vst.msk [vmem:[#allocation3 + $0x18] sm:$0xff] %vm195_vm4, %v578_v50  ;;  %1263 = vmatmul.mubr.msk.f32.vlgmr.msra.gmra.mrb[2].mxu0 %vm195_vm4, %v578_v50 }
 0x5f0   :  { %1355 = vmatpush3.bf16.msra.mxu0 %v1548_v7  ;;  %1284 = vmatprep.mubr.msk.f32.mxu0 %vm1479_vm2, %v1480_v14 }
 0x5f1   :  { %1356 = vmatprep.subr.bf16.mxu0 %v1478_v8 }
 0x5f4   :  { %1358 = vmatpush3.bf16.msra.mxu0 %v1564_v12 }
 0x5f5   :  { %1365 = vmatprep.subr.bf16.mxu0 %v1478_v8 }
 0x5f6   :  { %v973_v26 = vld [vmem:[#allocation3 + $0x18] sm:$0xff] }
 0x5f7   :  { %v1370_v30 = vpack.c.bf16 %v973_v26, %v972_v28 }
 0x6c2   :  { %v652_v51 = vpop.f32.mrb[2].mxu0 }
 0x6c3   :  { %v656_v52 = vadd.f32 %v652_v51, %v1610_v29  ;;  %v1264_v53 = vpop.f32.mrb[3].mxu0 }
 0x6c5   :  { %v1122_v54 = vmul.f32 -1.442695, %v656_v52 }
 0x6c7   :  { %1422 = vpow2.f32 %v1122_v54 }
 0x6c8   :  { %1424 = vtanh.f32 %v656_v52 }
 0x6d1   :  { %v1423_v55 = vpop.eup %1422 }
 0x6d2   :  { %v660_v56 = vadd.f32 1.0, %v1423_v55  ;;  %v1425_v57 = vpop.eup %1424 }
 0x6d4   :  { %1426 = vrcp.f32 %v660_v56 }
 0x6de   :  { %v1427_v58 = vpop.eup %1426 }
 0x6df   :  { %v664_v59 = vsel %vm193_vm3, %v1427_v58, %v1425_v57 }
 0x6e0   :  { %669 = vrot.lane.b32.xlu1 %v664_v59, %s1483_s28  ;;  %665 = vrot.lane.b32.xlu0 %v664_v59, %s1482_s27 }
 0x6e4   :  { %667 = vrot.lane.b32.xlu0 %v664_v59, %s1481_s4 }
 0x752   :  { %v670_v60 = vpop.permute.xlu1 %669  ;;  %v666_v29 = vpop.permute.xlu0 %665 }
 0x753   :  { %v672_v61 = vmul.f32 %v670_v60, %v664_v59  ;;  %v671_v62 = vmul.f32 %v666_v29, %v576_v47  ;;  %v1077_v60 = vld [vmem:[#allocation4] sm:$0x1] }
 0x755   :  { %v673_v63 = vadd.f32 %v672_v61, %v671_v62 }
 0x756   :  { %v668_v1 = vpop.permute.xlu0 %667 }
 0x757   :  { %1428 = vtanh.f32 %v673_v63 }
 0x761   :  { %v1429_v0 = vpop.eup %1428 }
 0x762   :  { %v675_v2 = vmul.f32 %v1429_v0, %v668_v1 }
 0x764   :  { %677 = vst.msk [vmem:[#allocation3 + $0x20] sm:$0xff] %vm195_vm4, %v675_v2  ;;  %1274 = vmatmul.mubr.msk.f32.vlgmr.msra.gmra.mrb[14].mxu1 %vm195_vm4, %v675_v2 }
 0x765   :  { %1361 = vmatpush3.bf16.msra.mxu1 %v1548_v7  ;;  %1295 = vmatprep.mubr.msk.f32.mxu1 %vm1479_vm2, %v1480_v14 }
 0x766   :  { %1362 = vmatprep.subr.bf16.mxu1 %v1478_v8 }
 0x769   :  { %1364 = vmatpush3.bf16.msra.mxu1 %v1564_v12 }
 0x76b   :  { %v974_v34 = vld [vmem:[#allocation3 + $0x20] sm:$0xff] }
 0x837   :  { %v749_v3 = vpop.f32.mrb[14].mxu1 }
 0x838   :  { %v753_v4 = vadd.f32 %v749_v3, %v1608_v27  ;;  %v1275_v5 = vpop.f32.mrb[15].mxu1 }
 0x83a   :  { %v1124_v6 = vmul.f32 -1.442695, %v753_v4 }
 0x83c   :  { %1430 = vpow2.f32 %v1124_v6  ;;  %v969_v6 = vld [vmem:[%s1754_s5] sm:$0x1]  ;;  %s1454_s5 = scalar_lea.vmem %s1097_s10, 16 }
 0x83d   :  { %1432 = vtanh.f32 %v753_v4  ;;  %p1455_p0 = scmp.ne.s32.totalorder %s1097_s10, %s1454_s5  ;;  %p1460_p2 = scmp.lt.s32.totalorder %s1458_s11, %s1454_s5 }
 0x83f   :  { %p1461_p3 = por %p1460_p2, %p1459_p1 }
 0x841   :  { %p1462_p4 = pnand %p1461_p3, %p1455_p0 }
 0x846   :  { %v1431_v9 = vpop.eup %1430 }
 0x847   :  { %v757_v10 = vadd.f32 1.0, %v1431_v9  ;;  %v1433_v11 = vpop.eup %1432  ;;  %v1084_v9 = vshrl.u32 %v191_v41, 7 }
 0x849   :  { %1434 = vrcp.f32 %v757_v10  ;;  %v1085_v10 = vsub.s32 0, %v1084_v9 }
 0x853   :  { %v1435_v13 = vpop.eup %1434 }
 0x854   :  { %v761_v7 = vsel %vm193_vm3, %v1435_v13, %v1433_v11  ;;  %v1075_v13 = vld [vmem:[%s1750_s1] sm:$0x1] }
 0x855   :  { %766 = vrot.lane.b32.xlu0 %v761_v7, %s1483_s28  ;;  %762 = vrot.lane.b32.xlu1 %v761_v7, %s1482_s27 }
 0x859   :  { %764 = vrot.lane.b32.xlu1 %v761_v7, %s1481_s4 }
 0x8c7   :  { %v767_v12 = vpop.permute.xlu0 %766  ;;  %v763_v27 = vpop.permute.xlu1 %762 }
 0x8c8   :  { %v769_v15 = vmul.f32 %v767_v12, %v761_v7  ;;  %v768_v16 = vmul.f32 %v763_v27, %v673_v63 }
 0x8ca   :  { %v770_v17 = vadd.f32 %v769_v15, %v768_v16 }
 0x8cb   :  { %v765_v20 = vpop.permute.xlu1 %764 }
 0x8cc   :  { %1436 = vtanh.f32 %v770_v17 }
 0x8d6   :  { %v1437_v19 = vpop.eup %1436 }
 0x8d7   :  { %v772_v21 = vmul.f32 %v1437_v19, %v765_v20 }
 0x8d9   :  { %774 = vst.msk [vmem:[#allocation3 + $0x28] sm:$0xff] %vm195_vm4, %v772_v21  ;;  %1285 = vmatmul.mubr.msk.f32.vlgmr.msra.gmra.mrb[4].mxu0 %vm195_vm4, %v772_v21 }
 0x8da   :  { %1368 = vmatpush3.bf16.xpose.msk.msra.mxu0 %vm1695_vm5, %v1366_v25  ;;  %1314 = vmatprep.mubr.msk.f32.mxu0 %vm1479_vm2, %v1480_v14 }
 0x8db   :  { %1369 = vmatprep.subr.bf16.mxu0 %v1478_v8 }
 0x8e0   :  { %v975_v32 = vld [vmem:[#allocation3 + $0x28] sm:$0xff] }
 0x8e1   :  { %v1374_v35 = vpack.c.bf16 %v975_v32, %v974_v34 }
 0x8e2   :  { %1372 = vmatpush3.bf16.xpose.msk.msra.mxu0 %vm1695_vm5, %v1370_v30 }
 0x8e3   :  { %1373 = vmatprep.subr.bf16.mxu0 %v1478_v8 }
 0x8ea   :  { %1376 = vmatpush3.bf16.xpose.msk.msra.mxu0 %vm1695_vm5, %v1374_v35 }
 0x8eb   :  { %1377 = vmatprep.subr.bf16.mxu0 %v1478_v8 }
 0x9ac   :  { %v846_v36 = vpop.f32.mrb[4].mxu0 }
 0x9ad   :  { %v850_v14 = vadd.f32 %v846_v36, %v1614_v33  ;;  %v1286_v37 = vpop.f32.mrb[5].mxu0 }
 0x9af   :  { %v1126_v38 = vmul.f32 -1.442695, %v850_v14 }
 0x9b1   :  { %1438 = vpow2.f32 %v1126_v38 }
 0x9b2   :  { %1440 = vtanh.f32 %v850_v14 }
 0x9bb   :  { %v1439_v39 = vpop.eup %1438 }
 0x9bc   :  { %v854_v40 = vadd.f32 1.0, %v1439_v39  ;;  %v1441_v43 = vpop.eup %1440 }
 0x9be   :  { %1442 = vrcp.f32 %v854_v40 }
 0x9c8   :  { %v1443_v44 = vpop.eup %1442 }
 0x9c9   :  { %v858_v23 = vsel %vm193_vm3, %v1443_v44, %v1441_v43 }
 0x9ca   :  { %863 = vrot.lane.b32.xlu1 %v858_v23, %s1483_s28  ;;  %859 = vrot.lane.b32.xlu0 %v858_v23, %s1482_s27 }
 0x9ce   :  { %861 = vrot.lane.b32.xlu0 %v858_v23, %s1481_s4 }
 0xa3c   :  { %v864_v8 = vpop.permute.xlu1 %863  ;;  %v860_v33 = vpop.permute.xlu0 %859 }
 0xa3d   :  { %v866_v45 = vmul.f32 %v864_v8, %v858_v23  ;;  %v865_v46 = vmul.f32 %v860_v33, %v770_v17 }
 0xa3f   :  { %v867_v47 = vadd.f32 %v866_v45, %v865_v46 }
 0xa40   :  { %v862_v49 = vpop.permute.xlu0 %861 }
 0xa41   :  { %1444 = vtanh.f32 %v867_v47 }
 0xa4b   :  { %v1445_v48 = vpop.eup %1444 }
 0xa4c   :  { %v869_v50 = vmul.f32 %v1445_v48, %v862_v49 }
 0xa4e   :  { %871 = vst.msk [vmem:[#allocation3 + $0x30] sm:$0xff] %vm195_vm4, %v869_v50  ;;  %1296 = vmatmul.mubr.msk.f32.vlgmr.msra.gmra.mrb[16].mxu1 %vm195_vm4, %v869_v50 }
 0xa55   :  { %v976_v3 = vld [vmem:[#allocation3 + $0x30] sm:$0xff] }
 0xb21   :  { %v943_v51 = vpop.f32.mrb[16].mxu1 }
 0xb22   :  { %v947_v52 = vadd.f32 %v943_v51, %v1612_v31  ;;  %v1297_v53 = vpop.f32.mrb[17].mxu1  ;;  %v1484_v31 = vmov 0  }
 0xb23   :  { %1389 = vset.pattern.permute.xlu0 %v1484_v31 }
 0xb24   :  { %v1128_v54 = vmul.f32 -1.442695, %v947_v52 }
 0xb26   :  { %1446 = vpow2.f32 %v1128_v54 }
 0xb27   :  { %1448 = vtanh.f32 %v947_v52 }
 0xb30   :  { %v1447_v55 = vpop.eup %1446 }
 0xb31   :  { %v951_v56 = vadd.f32 1.0, %v1447_v55  ;;  %v1449_v57 = vpop.eup %1448 }
 0xb33   :  { %1450 = vrcp.f32 %v951_v56 }
 0xb3d   :  { %v1451_v58 = vpop.eup %1450 }
 0xb3e   :  { %v955_v59 = vsel %vm193_vm3, %v1451_v58, %v1449_v57 }
 0xb3f   :  { %960 = vrot.lane.b32.xlu0 %v955_v59, %s1483_s28  ;;  %956 = vrot.lane.b32.xlu1 %v955_v59, %s1482_s27 }
 0xb43   :  { %958 = vrot.lane.b32.xlu1 %v955_v59, %s1481_s4  ;;  %1080 = vperm.xlu0 %1389, %v1077_v60  }
 0xbb1   :  { %v961_v29 = vpop.permute.xlu0 %960  ;;  %v957_v61 = vpop.permute.xlu1 %956 }
 0xbb2   :  { %v963_v62 = vmul.f32 %v961_v29, %v955_v59  ;;  %v962_v63 = vmul.f32 %v957_v61, %v867_v47 }
 0xbb4   :  { %v964_v0 = vadd.f32 %v963_v62, %v962_v63 }
 0xbb5   :  { %v959_v2 = vpop.permute.xlu1 %958 }
 0xbb6   :  { %1452 = vtanh.f32 %v964_v0 }
 0xbc0   :  { %v1453_v1 = vpop.eup %1452 }
 0xbc1   :  { %v966_v42 = vmul.f32 %v1453_v1, %v959_v2 }
 0xbc2   :  { %v1081_v11 = vpop.permute.xlu0 %1080 }
 0xbc3   :  { %968 = vst.msk [vmem:[#allocation3 + $0x38] sm:$0xff] %vm195_vm4, %v966_v42  ;;  %v1086_v7 = vrot.slane %v1081_v11, %v1085_v10 }
 0xbca   :  { %v977_v4 = vld [vmem:[#allocation3 + $0x38] sm:$0xff] }
 0xbcb   :  { %v1378_v5 = vpack.c.bf16 %v977_v4, %v976_v3 }
 0xbcd   :  { %1380 = vmatpush3.bf16.xpose.msk.msra.mxu0 %vm1695_vm5, %v1378_v5 }
 0xbd4   :  { %1315 = vmatmul.mubr.msk.f32.vlgmr.msra.gmra.mrb[6].mxu0 %vm195_vm4, %v969_v6 }
 0xca7   :  { %v1071_v12 = vpop.f32.mrb[6].mxu0 }
 0xca8   :  { %v1076_v27 = vadd.f32 %v1075_v13, %v1071_v12  ;;  %v1316_v15 = vpop.f32.mrb[7].mxu0 }
 0xcaa   :  { %v1087_v16 = vadd.f32 %v1086_v7, %v1076_v27 }
 0xcac   :  { %1089 = vst.msk [vmem:[#allocation5] sm:$0x1] %vm1088_vm6, %v1087_v16 }
 0xcad   :  { %1465 = shalt.err (!%p1462_p4)
}
 0xcae   :  { %s1466_s12 = scalar_lea.hbm %s1756_s7, 16 }
 0xcaf   :  { %p1467_p5 = scmp.ne.s32.totalorder %s1756_s7, %s1466_s12  ;;  %p1470_p6 = scmp.lt.u32.totalorder %s1466_s12, %s1756_s7 }
 0xcb1   :  { %p1472_p7 = pnand %p1470_p6, %p1467_p5 }
 0xcb3   :  { %1475 = shalt.err (!%p1472_p7)
}
 0xcb4   :  { %1099 = dma.vmem_to_hbm [thread:$0]  %s1097_s10, 16, %s1756_s7, [#allocation6]  }
 0xcb5   :  { %1476 = dma.done.wait [#allocation6], 16  }
 0xcb6   :  { %1477 = vsyncadd [#allocation6], 4294967280 }
 0xcb7   :  { %1103 = vsyncpa [#allocation6], 1 }

</bundles_post_ra>
